<compile_context>
chip_gen: v7x
topology: tpu7x:2x2x1
jax: 0.10.0
libtpu: 0.0.40
codegen_flags: <defaults>
</compile_context>

<pallas_src>
import functools

import jax
import jax.numpy as jnp
from jax.experimental import pallas as pl
from jax.experimental.pallas import tpu as pltpu


def _dice_loss_kernel(logits_ref, targets_ref, inter_ref, den_ref, *,
                      n_total, ignore_index, num_classes):
    j = pl.program_id(1)
    C, tn = logits_ref.shape

    # Zero the per-batch accumulators (resident output blocks) on the first
    # step of the reduction axis.
    @pl.when(j == 0)
    def _():
        inter_ref[...] = jnp.zeros_like(inter_ref)
        den_ref[...] = jnp.zeros_like(den_ref)

    x = logits_ref[...].astype(jnp.float32)            # (C, tn)
    t = targets_ref[...].astype(jnp.int32)             # (1, tn)

    ragged = (n_total % tn) != 0
    if ragged:
        # Ragged tail: out-of-bounds lanes hold unspecified data; mask them.
        lane = jax.lax.broadcasted_iota(jnp.int32, (1, tn), 1)
        col_valid = (j * tn + lane) < n_total           # (1, tn)
        x = jnp.where(col_valid, x, 0.0)                # keep exp() finite
        mask_b = col_valid & (t != ignore_index)
    else:
        mask_b = (t != ignore_index)
    mask = mask_b.astype(jnp.float32)                   # (1, tn)

    # One-hot along the class (sublane) axis.
    cls = jax.lax.broadcasted_iota(jnp.int32, (C, tn), 0)
    one_hot = (cls == t).astype(jnp.float32)            # (C, tn)
    if ragged or (0 <= ignore_index < num_classes):
        # Needed when padded/garbage targets (ragged tail) or a real class id
        # used as ignore_index could produce a spurious one-hot hit.
        one_hot = one_hot * mask

    # Softmax over classes; the ignore/valid mask is folded into the (1, tn)
    # reciprocal so it costs no extra (C, tn) multiply.
    m = jnp.max(x, axis=0, keepdims=True)               # (1, tn)
    e = jnp.exp(x - m)                                  # (C, tn)
    inv = pl.reciprocal(jnp.sum(e, axis=0, keepdims=True), approx=True) * mask
    probs = e * inv                                     # (C, tn), masked

    inter = probs * one_hot                             # (C, tn)
    den = probs + one_hot                               # (C, tn)

    # Lane-fold the (C, tn) contributions into (C, 128) with tile-aligned
    # static slices (pure VPU adds); the accumulator stores stay (C, 128)
    # per step regardless of tn, and the final cross-lane reduce is deferred
    # to the wrapper.
    nblk = tn // 128

    def fold(v):
        r = v[:, 0:128]
        for blk in range(1, nblk):
            r = r + v[:, blk * 128:(blk + 1) * 128]
        return r

    inter_ref[...] += fold(inter)
    den_ref[...] += fold(den)


def dice_loss_pallas(logits, targets, smooth=1.0, ignore_index=-1, tile_n=None):
    """Pallas DiceLoss forward.

    logits:  (B, C, N) float (any float dtype; no wrapper upcast)
             or (B*N, C) float
    targets: (B, N) int  or  (B*N,) int
    returns: scalar float32 loss
    """
    if logits.ndim == 2:
        # TODO(synk): handle the (M, C) layout natively with (tm, C) tiles and
        # an in-kernel XLU transpose instead of this wrapper-side HBM rewrite.
        logits = jnp.transpose(logits, (1, 0))[None]     # (1, C, M)
        targets = targets.reshape(1, -1)
    B, C, N = logits.shape
    targets3d = targets.reshape(B, 1, N)                 # dtype preserved

    itemsize = jnp.dtype(logits.dtype).itemsize
    if tile_n is None:
        # ~1 MiB of logits per grid step to amortize per-step overhead;
        # capped so the unrolled lane-fold and f32 temporaries stay modest.
        tile_n = (1 << 20) // max(1, C * itemsize)
    tn = max(128, (int(tile_n) // 128) * 128)
    tn = min(tn, 32768)
    n128 = pl.cdiv(N, 128) * 128
    tn = min(tn, n128)
    num_j = pl.cdiv(N, tn)

    kernel = functools.partial(
        _dice_loss_kernel,
        n_total=int(N),
        ignore_index=int(ignore_index),
        num_classes=int(C),
    )

    cost = pl.CostEstimate(
        flops=8 * B * N * C,
        transcendentals=B * N * C,
        bytes_accessed=(B * N * C * itemsize
                        + B * N * jnp.dtype(targets.dtype).itemsize
                        + 2 * B * C * 128 * 4),
    )

    inter, den = pl.pallas_call(
        kernel,
        out_shape=(jax.ShapeDtypeStruct((B, C, 128), jnp.float32),
                   jax.ShapeDtypeStruct((B, C, 128), jnp.float32)),
        grid_spec=pltpu.PrefetchScalarGridSpec(
            num_scalar_prefetch=0,
            grid=(B, num_j),
            in_specs=[
                # logits tile: full class axis on sublanes, tn lanes.
                pl.BlockSpec((None, C, tn), lambda b, j: (b, 0, j)),
                # targets tile: (1, tn) in their native int dtype.
                pl.BlockSpec((None, 1, tn), lambda b, j: (b, 0, j)),
            ],
            out_specs=[
                # Per-batch lane-partial accumulators, resident across j.
                pl.BlockSpec((None, C, 128), lambda b, j: (b, 0, 0)),
                pl.BlockSpec((None, C, 128), lambda b, j: (b, 0, 0)),
            ],
        ),
        compiler_params=pltpu.CompilerParams(
            dimension_semantics=("parallel", "arbitrary"),
            vmem_limit_bytes=48 * 1024 * 1024,
        ),
        cost_estimate=cost,
    )(logits, targets3d)

    # Tiny epilogue in XLA: reduce the (B, C, 128) partials to the scalar loss.
    inter_c = jnp.sum(inter, axis=(0, 2))                # (C,)
    den_c = jnp.sum(den, axis=(0, 2))                    # (C,)
    dice = (2.0 * inter_c + float(smooth)) / (den_c + float(smooth))
    return 1.0 - jnp.mean(dice)


def dice_loss_ref(logits, targets, smooth=1.0, ignore_index=-1):
    """Pure-JAX reference mirroring the PyTorch forward."""
    B, C, N = logits.shape
    l2 = jnp.transpose(logits, (0, 2, 1)).reshape(-1, C).astype(jnp.float32)
    t = targets.reshape(-1)
    one_hot = (jnp.arange(C)[None, :] == t[:, None]).astype(jnp.float32)
    mask = (t != ignore_index).astype(jnp.float32)[:, None]
    one_hot = one_hot * mask
    probs = jax.nn.softmax(l2, axis=1) * mask
    numerator = 2.0 * (probs * one_hot).sum(0) + smooth
    denominator = probs.sum(0) + one_hot.sum(0) + smooth
    return 1.0 - (numerator / denominator).mean()


if __name__ == "__main__":
    key = jax.random.PRNGKey(0)
    k1, k2, k3, k4, k5, k6 = jax.random.split(key, 6)

    # Case 1: small ragged case (N not a multiple of 128 -> in-kernel tail mask).
    B, C, N = 2, 4, 16
    logits = jax.random.normal(k1, (B, C, N), dtype=jnp.float32)
    targets = jax.random.randint(k2, (B, N), 0, C, dtype=jnp.int32)
    ignore_mask = jax.random.bernoulli(k3, p=0.2, shape=(B, N))
    targets = jnp.where(ignore_mask, jnp.int32(-1), targets)

    loss = jax.block_until_ready(
        dice_loss_pallas(logits, targets, smooth=1.0, ignore_index=-1))
    ref = dice_loss_ref(logits, targets, smooth=1.0, ignore_index=-1)
    assert jnp.allclose(loss, ref, atol=1e-4, rtol=1e-4), (loss, ref)

    # Case 1b: bf16 logits stay bf16 in HBM; kernel upcasts internally.
    logits_bf16 = logits.astype(jnp.bfloat16)
    loss_bf16 = jax.block_until_ready(
        dice_loss_pallas(logits_bf16, targets, smooth=1.0, ignore_index=-1))
    ref_bf16 = dice_loss_ref(logits_bf16.astype(jnp.float32), targets,
                             smooth=1.0, ignore_index=-1)
    assert jnp.allclose(loss_bf16, ref_bf16, atol=1e-4, rtol=1e-4), (
        loss_bf16, ref_bf16)

    # Case 2: lane-aligned N (non-ragged fast path, no tail masking ops).
    B2, C2, N2 = 2, 4, 256
    logits2 = jax.random.normal(k4, (B2, C2, N2), dtype=jnp.float32)
    targets2 = jax.random.randint(k5, (B2, N2), 0, C2, dtype=jnp.int32)
    ignore_mask2 = jax.random.bernoulli(k6, p=0.1, shape=(B2, N2))
    targets2 = jnp.where(ignore_mask2, jnp.int32(-1), targets2)

    loss2 = jax.block_until_ready(
        dice_loss_pallas(logits2, targets2, smooth=1.0, ignore_index=-1))
    ref2 = dice_loss_ref(logits2, targets2, smooth=1.0, ignore_index=-1)
    assert jnp.allclose(loss2, ref2, atol=1e-4, rtol=1e-4), (loss2, ref2)

    print("KERNEL_OK")
</pallas_src>

<mosaic_0001>
module attributes {stable_mosaic.version = 11 : i64} {
  func.func @_dice_loss_kernel(%arg0: i32, %arg1: i32, %arg2: memref<1x4x128xf32, #tpu.memory_space<vmem>>, %arg3: memref<1x1x128xi32, #tpu.memory_space<vmem>>, %arg4: memref<1x4x128xf32, #tpu.memory_space<vmem>>, %arg5: memref<1x4x128xf32, #tpu.memory_space<vmem>>) attributes {dimension_semantics = [#tpu.dimension_semantics<parallel>, #tpu.dimension_semantics<arbitrary>], iteration_bounds = array<i64: 2, 1>, scalar_prefetch = 0 : i64, scratch_operands = 0 : i64, tpu.core_type = #tpu.core_type<tc>, window_params = [{transform_indices = @transform_0, window_bounds = array<i64: 1, 4, 128>}, {transform_indices = @transform_1, window_bounds = array<i64: 1, 1, 128>}, {transform_indices = @transform_2, window_bounds = array<i64: 1, 4, 128>}, {transform_indices = @transform_3, window_bounds = array<i64: 1, 4, 128>}]} {
    %c0_i32 = arith.constant 0 : i32
    %0 = arith.cmpi eq, %arg1, %c0_i32 : i32
    %1 = arith.extui %0 : i1 to i32
    %c0_i32_0 = arith.constant 0 : i32
    %2 = arith.cmpi ne, %1, %c0_i32_0 : i32
    scf.if %2 {
      %cst_20 = arith.constant 0.000000e+00 : f32
      %54 = vector.broadcast %cst_20 : f32 to vector<4x128xf32>
      %c0_21 = arith.constant 0 : index
      %c0_22 = arith.constant 0 : index
      %c0_23 = arith.constant 0 : index
      %55 = vector.load %arg4[%c0_21, %c0_22, %c0_23] : memref<1x4x128xf32, #tpu.memory_space<vmem>>, vector<1x4x128xf32>
      %56 = vector.shape_cast %55 : vector<1x4x128xf32> to vector<4x128xf32>
      %57 = vector.shape_cast %54 : vector<4x128xf32> to vector<1x4x128xf32>
      tpu.vector_store %arg4[%c0_21, %c0_22, %c0_23], %57 {strides = array<i32>} : memref<1x4x128xf32, #tpu.memory_space<vmem>>, vector<1x4x128xf32>,
      %cst_24 = arith.constant 0.000000e+00 : f32
      %58 = vector.broadcast %cst_24 : f32 to vector<4x128xf32>
      %c0_25 = arith.constant 0 : index
      %c0_26 = arith.constant 0 : index
      %c0_27 = arith.constant 0 : index
      %59 = vector.load %arg5[%c0_25, %c0_26, %c0_27] : memref<1x4x128xf32, #tpu.memory_space<vmem>>, vector<1x4x128xf32>
      %60 = vector.shape_cast %59 : vector<1x4x128xf32> to vector<4x128xf32>
      %61 = vector.shape_cast %58 : vector<4x128xf32> to vector<1x4x128xf32>
      tpu.vector_store %arg5[%c0_25, %c0_26, %c0_27], %61 {strides = array<i32>} : memref<1x4x128xf32, #tpu.memory_space<vmem>>, vector<1x4x128xf32>,
    } else {
    }
    %c0 = arith.constant 0 : index
    %c0_1 = arith.constant 0 : index
    %c0_2 = arith.constant 0 : index
    %3 = vector.load %arg2[%c0, %c0_1, %c0_2] : memref<1x4x128xf32, #tpu.memory_space<vmem>>, vector<1x4x128xf32>
    %4 = vector.shape_cast %3 : vector<1x4x128xf32> to vector<4x128xf32>
    %c0_3 = arith.constant 0 : index
    %c0_4 = arith.constant 0 : index
    %c0_5 = arith.constant 0 : index
    %5 = vector.load %arg3[%c0_3, %c0_4, %c0_5] : memref<1x1x128xi32, #tpu.memory_space<vmem>>, vector<1x1x128xi32>
    %6 = vector.shape_cast %5 : vector<1x1x128xi32> to vector<1x128xi32>
    %7 = tpu.iota {dimensions = array<i32: 1>} : vector<1x128xi32>
    %c128_i32 = arith.constant 128 : i32
    %8 = arith.muli %arg1, %c128_i32 : i32
    %9 = vector.broadcast %8 : i32 to vector<1x128xi32>
    %10 = arith.addi %9, %7 : vector<1x128xi32>
    %c16_i32 = arith.constant 16 : i32
    %11 = vector.broadcast %c16_i32 : i32 to vector<1x128xi32>
    %12 = arith.cmpi slt, %10, %11 : vector<1x128xi32>
    %cst = arith.constant 0.000000e+00 : f32
    %13 = vector.shape_cast %12 : vector<1x128xi1> to vector<1x128xi1>
    %14 = vector.broadcast %13 : vector<1x128xi1> to vector<4x128xi1>
    %15 = vector.broadcast %cst : f32 to vector<4x128xf32>
    %16 = arith.select %14, %4, %15 : vector<4x128xi1>, vector<4x128xf32>
    %c-1_i32 = arith.constant -1 : i32
    %17 = vector.broadcast %c-1_i32 : i32 to vector<1x128xi32>
    %18 = arith.cmpi ne, %6, %17 : vector<1x128xi32>
    %19 = arith.andi %12, %18 : vector<1x128xi1>
    %20 = arith.extui %19 : vector<1x128xi1> to vector<1x128xi32>
    %21 = arith.sitofp %20 : vector<1x128xi32> to vector<1x128xf32>
    %22 = tpu.iota {dimensions = array<i32: 0>} : vector<4x128xi32>
    %23 = vector.broadcast %6 : vector<1x128xi32> to vector<4x128xi32>
    %24 = arith.cmpi eq, %22, %23 : vector<4x128xi32>
    %25 = arith.extui %24 : vector<4x128xi1> to vector<4x128xi32>
    %26 = arith.sitofp %25 : vector<4x128xi32> to vector<4x128xf32>
    %27 = vector.broadcast %21 : vector<1x128xf32> to vector<4x128xf32>
    %28 = arith.mulf %26, %27 : vector<4x128xf32>
    %cst_6 = arith.constant dense<0xFF800000> : vector<128xf32>
    %29 = vector.multi_reduction <maximumf>, %16, %cst_6 [0] : vector<4x128xf32> to vector<128xf32>
    %30 = vector.shape_cast %29 : vector<128xf32> to vector<1x128xf32>
    %31 = vector.broadcast %30 : vector<1x128xf32> to vector<4x128xf32>
    %32 = arith.subf %16, %31 : vector<4x128xf32>
    %33 = math.exp %32 : vector<4x128xf32>
    %cst_7 = arith.constant dense<0.000000e+00> : vector<128xf32>
    %34 = vector.multi_reduction <add>, %33, %cst_7 [0] : vector<4x128xf32> to vector<128xf32>
    %35 = vector.shape_cast %34 : vector<128xf32> to vector<1x128xf32>
    %36 = tpu.reciprocal %35 {approx = true} : vector<1x128xf32> -> vector<1x128xf32>
    %37 = arith.mulf %36, %21 : vector<1x128xf32>
    %38 = vector.broadcast %37 : vector<1x128xf32> to vector<4x128xf32>
    %39 = arith.mulf %33, %38 : vector<4x128xf32>
    %40 = arith.mulf %39, %28 : vector<4x128xf32>
    %41 = arith.addf %39, %28 : vector<4x128xf32>
    %c0_8 = arith.constant 0 : index
    %c0_9 = arith.constant 0 : index
    %c0_10 = arith.constant 0 : index
    %42 = vector.load %arg4[%c0_8, %c0_9, %c0_10] : memref<1x4x128xf32, #tpu.memory_space<vmem>>, vector<1x4x128xf32>
    %43 = vector.shape_cast %42 : vector<1x4x128xf32> to vector<4x128xf32>
    %44 = arith.addf %43, %40 : vector<4x128xf32>
    %c0_11 = arith.constant 0 : index
    %c0_12 = arith.constant 0 : index
    %c0_13 = arith.constant 0 : index
    %45 = vector.load %arg4[%c0_11, %c0_12, %c0_13] : memref<1x4x128xf32, #tpu.memory_space<vmem>>, vector<1x4x128xf32>
    %46 = vector.shape_cast %45 : vector<1x4x128xf32> to vector<4x128xf32>
    %47 = vector.shape_cast %44 : vector<4x128xf32> to vector<1x4x128xf32>
    tpu.vector_store %arg4[%c0_11, %c0_12, %c0_13], %47 {strides = array<i32>} : memref<1x4x128xf32, #tpu.memory_space<vmem>>, vector<1x4x128xf32>,
    %c0_14 = arith.constant 0 : index
    %c0_15 = arith.constant 0 : index
    %c0_16 = arith.constant 0 : index
    %48 = vector.load %arg5[%c0_14, %c0_15, %c0_16] : memref<1x4x128xf32, #tpu.memory_space<vmem>>, vector<1x4x128xf32>
    %49 = vector.shape_cast %48 : vector<1x4x128xf32> to vector<4x128xf32>
    %50 = arith.addf %49, %41 : vector<4x128xf32>
    %c0_17 = arith.constant 0 : index
    %c0_18 = arith.constant 0 : index
    %c0_19 = arith.constant 0 : index
    %51 = vector.load %arg5[%c0_17, %c0_18, %c0_19] : memref<1x4x128xf32, #tpu.memory_space<vmem>>, vector<1x4x128xf32>
    %52 = vector.shape_cast %51 : vector<1x4x128xf32> to vector<4x128xf32>
    %53 = vector.shape_cast %50 : vector<4x128xf32> to vector<1x4x128xf32>
    tpu.vector_store %arg5[%c0_17, %c0_18, %c0_19], %53 {strides = array<i32>} : memref<1x4x128xf32, #tpu.memory_space<vmem>>, vector<1x4x128xf32>,
    return
  }
  func.func @transform_0(%arg0: i32, %arg1: i32) -> (i32, i32, i32) {
    %c0_i32 = arith.constant 0 : i32
    %c0_i32_0 = arith.constant 0 : i32
    return %arg0, %c0_i32, %arg1 : i32, i32, i32
  }
  func.func @transform_1(%arg0: i32, %arg1: i32) -> (i32, i32, i32) {
    %c0_i32 = arith.constant 0 : i32
    %c0_i32_0 = arith.constant 0 : i32
    return %arg0, %c0_i32, %arg1 : i32, i32, i32
  }
  func.func @transform_2(%arg0: i32, %arg1: i32) -> (i32, i32, i32) {
    %c0_i32 = arith.constant 0 : i32
    %c0_i32_0 = arith.constant 0 : i32
    %c0_i32_1 = arith.constant 0 : i32
    return %arg0, %c0_i32, %c0_i32_0 : i32, i32, i32
  }
  func.func @transform_3(%arg0: i32, %arg1: i32) -> (i32, i32, i32) {
    %c0_i32 = arith.constant 0 : i32
    %c0_i32_0 = arith.constant 0 : i32
    %c0_i32_1 = arith.constant 0 : i32
    return %arg0, %c0_i32, %c0_i32_0 : i32, i32, i32
  }
}

</mosaic_0001>

<bundles_post_ra>
// kernel: tpu_custom_call.1
= control target key start
LH: loop header
LB: loop body
LE: loop exit
PB: predicated region body
PF: predicated region fallthrough
CT: control target
= control target key end

     0   :  { %9 = vsyncpa [#allocation3], 0  ;;  %s940_s0 = inlined_call_operand.hbm [shape: f32[2,4,16], index: 0, kind: input, shape index: {}]   ;;  %s941_s1 = inlined_call_operand.vmem [shape: s32[2,1,16], index: 1, kind: input, shape index: {}]   ;;  %s942_s2 = inlined_call_operand.hbm [shape: f32[2,4,128], index: 2, kind: output, shape index: {0}]   ;;  %s943_s3 = inlined_call_operand.hbm [shape: f32[2,4,128], index: 3, kind: output, shape index: {1}]  }
   0x1   :  { %11 = vsyncpa [#allocation3 + $0x1], 0 }
   0x2   :  { %12 = vsyncpa [#allocation4], 0 }
   0x3   :  { %14 = vsyncpa [#allocation4 + $0x1], 0 }
   0x4   :  { %15 = vsyncpa [#allocation7], 0 }
   0x5   :  { %17 = vsyncpa [#allocation7 + $0x1], 0  ;;  %s720_s12 = smov 0   ;;  %s722_s13 = smov 0  }
   0x6   :  { %s724_s14 = smov 0   ;;  %s726_s15 = smov 0  }
   0x7   :  { %s728_s16 = smov 0   ;;  %s730_s17 = smov 0  }
   0x8 LB: > { %s460_s18 = sadd.s32 4294967295, %s694_s17   ;;  %s461_s19 = sadd.s32 4294967294, %s694_s17   ;;  %s694_s17 = sphi %s730_s17, %s23_s17   ;;  %s690_s16 = sphi %s728_s16, %s959_s16   ;;  %s686_s15 = sphi %s726_s15, %s958_s15   ;;  %s682_s14 = sphi %s724_s14, %s957_s14   ;;  %s678_s13 = sphi %s722_s13, %s956_s13   ;;  %s674_s12 = sphi %s720_s12, %s955_s12  }
   0x9   : > { %s35_s20 = sadd.s32 1, %s690_s16  ;;  %s44_s21 = sadd.s32 1, %s682_s14 }
   0xa   : > { %p37_p0 = scmp.ge.s32.totalorder %s35_s20, 2  ;;  %p51_p1 = scmp.ne.s32.totalorder %s682_s14, %s678_s13 }
   0xb   : > { %p52_p2 = scmp.eq.s32.totalorder %s694_s17, 0  ;;  %p57_p3 = scmp.ne.s32.totalorder %s678_s13, %s674_s12 }
   0xc   : > { %s961_s20 = smov (%p37_p0, %s35_s20), 0  ;;  %p58_p5 = scmp.eq.s32.totalorder %s460_s18, 0 }
   0xd   : > { %p761_p4 = por %p52_p2, %p51_p1  ;;  %s39_s23 = ssub.s32 %s690_s16, %s961_s20 }
   0xe   : > { %p109_p6 = scmp.eq.s32.totalorder %s460_s18, 1  ;;  %p42_p7 = scmp.eq.s32.totalorder %s39_s23, 0 }
   0xf   : > { %p767_p8 = por %p58_p5, %p57_p3  ;;  %p115_p10 = scmp.eq.s32.totalorder %s461_s19, 1 }
  0x10   : > { %p771_p9 = por %p109_p6, %p51_p1  ;;  %p495_p13 = scmp.lt.s32.totalorder %s694_s17, 2 }
  0x11   : > { %s776_s26 = scalar_select %p42_p7, %s682_s14, %s44_s21  }
  0x12   : > { %s947_s25 = scalar_select %p771_p9, 1, 0 }
  0x13   : > { %p778_p11 = por %p115_p10, %p57_p3  ;;  %s161_s28 = sand.u32 1, %s682_s14  }
  0x14   : > { %s464_s29 = sshll.u32 %s161_s28, 2  ;;  %s465_s30 = sshll.u32 %s690_s16, 6 }
  0x15   : > { %s948_s27 = scalar_select %p778_p11, 1, 0 }
  0x16   : > { %s789_s6 = scalar_lea.hbm %s940_s0, %s465_s30  ;;  %s165_s7 = scalar_lea.vmem [#allocation2], %s464_s29 }
  0x17   : > { %s173_s8 = sshll.u32 %s165_s7, 4  ;;  %p795_p0 = pnand %p495_p13, %p761_p4  ;;  %s791_s8 = int_to_ptr.vmem [resolvable:$true] %s173_s8 }
  0x18   : > { %s162_s10 = scalar_lea.sflag [#allocation3], %s161_s28  ;;  %s550_s11 = scalar_lea.hbm %s789_s6, 64 }
  0x19   : > { %p551_p3 = scmp.ne.s32.totalorder %s789_s6, %s550_s11  ;;  %p552_p5 = pneg %p795_p0 }
  0x1a   : > { %s555_s21 = scalar_lea.hbm %s940_s0, 128  ;;  %p556_p4 = scmp.lt.u32.totalorder %s789_s6, %s940_s0 }
  0x1b   : > { %p553_p6 = pnand %p552_p5, %p551_p3  ;;  %p557_p10 = scmp.lt.u32.totalorder %s555_s21, %s550_s11 }
  0x1c   : > { %p559_p12 = scmp.lt.u32.totalorder %s550_s11, %s789_s6 }
  0x1d   : > { %p554_p7 = pneg %p553_p6  ;;  %p558_p13 = por %p557_p10, %p556_p4 }
  0x1f   : > { %p560_p1 = por %p559_p12, %p558_p13 }
  0x21   : > { %p561_p2 = pnand %p560_p1, %p554_p7 }
  0x23   : > { %564 = shalt.err (!%p561_p2)
}
  0x24   : > { %s565_s28 = scalar_lea.vmem %s791_s8, 64  ;;  %s696_s29 = smov [#allocation2]  }
  0x25   : > { %p566_p3 = scmp.ne.s32.totalorder %s791_s8, %s565_s28  ;;  %s570_s30 = sshll.u32 %s696_s29, 4  ;;  %s571_s30 = int_to_ptr.vmem [resolvable:$false] %s570_s30 }
  0x26   : > { %s572_s4 = scalar_lea.vmem %s571_s30, 128  ;;  %p573_p9 = scmp.lt.s32.totalorder %s791_s8, %s571_s30 }
  0x27   : > { %p568_p6 = pnand %p566_p3, %p552_p5  ;;  %p574_p4 = scmp.lt.s32.totalorder %s572_s4, %s565_s28 }
  0x29   : > { %p569_p11 = pneg %p568_p6  ;;  %p575_p10 = por %p574_p4, %p573_p9 }
  0x2b   : > { %p576_p12 = pnand %p575_p10, %p569_p11 }
  0x2d   : > { %579 = shalt.err (!%p576_p12)
}
  0x2e   : > { %487 = dma.hbm_to_vmem [thread:$0]  (!%p795_p0), %s789_s6, 64, %s791_s8, %s162_s10  }
  0x2f   : > { %p950_p1 = scmp.lt.s32.totalorder %s694_s17, 3  ;;  %p951_p2 = scmp.ge.s32.totalorder %s694_s17, 1 }
  0x31   : > { %p188_p5 = pnand %p951_p2, %p950_p1 }
  0x32   : > { %s831_s5 = sand.u32 (!%p188_p5), 1, %s678_s13  }
  0x33   : > { %191 = sbr.rel (%p188_p5) target bundleno = 164 (0xa4), region = 28  ;;  %s467_s7 = sshll.u32 (!%p188_p5), %s831_s5, 2 }
  0x34   : > { %s194_s11 = scalar_lea.sflag (!%p188_p5), [#allocation3], %s831_s5  ;;  %s197_s18 = scalar_lea.vmem (!%p188_p5), [#allocation2], %s467_s7 }
  0x3a   : > { %661 = dma.done.wait (%p767_p8), %s194_s11, 64  }
  0x3b   : > { %663 = vsyncadd (%p767_p8), %s194_s11, 4294967232  ;;  %v245_v0 = vlaneseq  ;;  %s839_s6 = scalar_lea.vmem [#allocation5], %s467_s7  ;;  %v697_v1 = vmov 0.0   ;;  %s842_s8 = scalar_lea.vmem [#allocation6], %s467_s7  ;;  %vm272_vm1 = vcmask 1043456  }
  0x3c   : > { %241 = vst [vmem:[%s839_s6] sm:$0xf] %v697_v1  ;;  %242 = vst [vmem:[%s842_s8] sm:$0xf] %v697_v1  ;;  %v243_v3 = vld [vmem:[%s197_s18] sm:$0xf]  ;;  %p231_p8 = scmp.lt.s32.totalorder %s686_s15, 1  ;;  %s474_s21 = sshll.u32 %s686_s15, 6 }
  0x3d   : > { %v246_v2 = vand.u32 127, %v245_v0  ;;  %v259_v20 = vshrl.u32 %v245_v0, 7  ;;  %s324_s22 = sshll.u32 %s839_s6, 4  ;;  %s337_s23 = sshll.u32 %s842_s8, 4  ;;  %s862_s22 = int_to_ptr.vmem [resolvable:$true] %s324_s22  ;;  %s869_s23 = int_to_ptr.vmem [resolvable:$true] %s337_s23 }
  0x3e   : > { %s232_s24 = scalar_select %p231_p8, %s686_s15, 1 }
  0x3f   : > { %vm250_vm0 = vcmp.lt.s32.totalorder %v246_v2, 16  ;;  %v262_v24 = vsub.s32 0, %v259_v20  ;;  %s860_s30 = scalar_lea.hbm %s942_s2, %s474_s21  ;;  %s867_s15 = scalar_lea.hbm %s943_s3, %s474_s21 }
  0x40   : > { %v253_v4 = vsel %vm250_vm0, %v243_v3, 0.0  ;;  %s236_s19 = scalar_lea.vmem %s941_s1, %s232_s24  ;;  %s306_s11 = scalar_lea.sflag [#allocation4], %s831_s5 }
  0x41   : > { %v273_v5 = vsel %vm272_vm1, %v253_v4, -inf  ;;  %v244_v23 = vld [vmem:[%s236_s19] sm:$0x1]  ;;  %s580_s18 = scalar_lea.vmem %s862_s22, 64  ;;  %p952_p11 = scmp.ne.s32.totalorder %s947_s25, 0 }
  0x42   : > { %v274_v6 = vrot.slane %v273_v5, 4  ;;  %vm254_vm2 = vcmp.ne.s32.totalorder %v244_v23, 4294967295  ;;  %v263_v25 = vrot.slane %v244_v23, %v262_v24  ;;  %p581_p9 = scmp.ne.s32.totalorder %s862_s22, %s580_s18  ;;  %s698_s24 = smov [#allocation5]  }
  0x43   : > { %vm255_vm3 = vmand %vm250_vm0, %vm254_vm2  ;;  %v299_v34 = vld [vmem:[%s839_s6] sm:$0xf]  ;;  %v302_v35 = vld [vmem:[%s842_s8] sm:$0xf]  ;;  %s584_s9 = sshll.u32 %s698_s24, 4  ;;  %s585_s9 = int_to_ptr.vmem [resolvable:$false] %s584_s9 }
  0x44   : > { %v275_v7 = vmax.f32 %v273_v5, %v274_v6  ;;  %vm264_vm4 = vcmp.eq.s32.totalorder %v259_v20, %v263_v25  ;;  %v470_v26 = vsel %vm255_vm3, 1.0, %v697_v1  ;;  %p582_p0 = pnand %p581_p9, %p952_p11  ;;  %s586_s10 = scalar_lea.vmem %s585_s9, 128 }
  0x45   : > { %v270_v27 = vrot.slane %v470_v26, %v262_v24  ;;  %v471_v29 = vsel %vm264_vm4, 1.0, %v697_v1  ;;  %p587_p13 = scmp.lt.s32.totalorder %s862_s22, %s585_s9  ;;  %p588_p3 = scmp.lt.s32.totalorder %s586_s10, %s580_s18 }
  0x46   : > { %v276_v8 = vrot.slane %v275_v7, 2  ;;  %p583_p7 = pneg %p582_p0 }
  0x47   : > { %v271_v31 = vmul.f32 %v471_v29, %v270_v27  ;;  %p589_p6 = por %p588_p3, %p587_p13 }
  0x48   : > { %v277_v9 = vmax.f32 %v275_v7, %v276_v8 }
  0x49   : > { %p590_p4 = pnand %p589_p6, %p583_p7 }
  0x4a   : > { %v278_v10 = vrot.slane %v277_v9, 1 }
  0x4c   : > { %v279_v11 = vmax.f32 %v277_v9, %v278_v10 }
  0x4e   : > { %v280_v12 = vsub.f32 %v253_v4, %v279_v11 }
  0x50   : > { %v281_v13 = vmul.f32 1.442695, %v280_v12 }
  0x52   : > { %546 = vpow2.f32 %v281_v13 }
  0x5c   : > { %v547_v14 = vpop.eup %546 }
  0x5d   : > { %v283_v15 = vsel %vm272_vm1, %v547_v14, 0.0 }
  0x5e   : > { %v284_v16 = vrot.slane %v283_v15, 4 }
  0x60   : > { %v285_v17 = vadd.f32 %v284_v16, %v283_v15 }
  0x62   : > { %v286_v18 = vrot.slane %v285_v17, 2 }
  0x64   : > { %v287_v19 = vadd.f32 %v286_v18, %v285_v17 }
  0x66   : > { %v288_v21 = vrot.slane %v287_v19, 1 }
  0x68   : > { %v289_v22 = vadd.f32 %v288_v21, %v287_v19 }
  0x6a   : > { %548 = vrcp.f32 %v289_v22 }
  0x74   : > { %v549_v28 = vpop.eup %548 }
  0x75   : > { %v291_v30 = vmul.f32 %v549_v28, %v470_v26 }
  0x77   : > { %v295_v32 = vrot.slane %v291_v30, %v262_v24 }
  0x79   : > { %v296_v33 = vmul.f32 %v547_v14, %v295_v32 }
  0x7b   : > { %v297_v36 = vmul.f32 %v296_v33, %v271_v31  ;;  %v298_v37 = vadd.f32 %v296_v33, %v271_v31 }
  0x7d   : > { %v300_v38 = vadd.f32 %v299_v34, %v297_v36  ;;  %v303_v39 = vadd.f32 %v302_v35, %v298_v37 }
  0x7f   : > { %301 = vst [vmem:[%s839_s6] sm:$0xf] %v300_v38  ;;  %304 = vst [vmem:[%s842_s8] sm:$0xf] %v303_v39 }
  0x80   : > { %593 = shalt.err (!%p590_p4)
}
  0x81   : > { %s594_s6 = scalar_lea.hbm %s860_s30, 64  ;;  %s598_s21 = scalar_lea.hbm %s942_s2, 128 }
  0x82   : > { %p595_p10 = scmp.ne.s32.totalorder %s860_s30, %s594_s6  ;;  %p599_p2 = scmp.lt.u32.totalorder %s860_s30, %s942_s2 }
  0x83   : > { %p600_p5 = scmp.lt.u32.totalorder %s598_s21, %s594_s6  ;;  %p602_p9 = scmp.lt.u32.totalorder %s594_s6, %s860_s30 }
  0x84   : > { %p596_p12 = pnand %p595_p10, %p952_p11 }
  0x85   : > { %p601_p8 = por %p600_p5, %p599_p2 }
  0x86   : > { %p597_p1 = pneg %p596_p12 }
  0x87   : > { %p603_p0 = por %p602_p9, %p601_p8 }
  0x89   : > { %p604_p7 = pnand %p603_p0, %p597_p1 }
  0x8b   : > { %607 = shalt.err (!%p604_p7)
}
  0x8c   : > { %480 = dma.vmem_to_hbm [thread:$0]  (%p952_p11), %s862_s22, 64, %s860_s30, %s306_s11  }
  0x8d   : > { %s311_s4 = scalar_lea.sflag [#allocation7], %s831_s5  ;;  %s608_s7 = scalar_lea.vmem %s869_s23, 64 }
  0x8e   : > { %p609_p13 = scmp.ne.s32.totalorder %s869_s23, %s608_s7  ;;  %s699_s18 = smov [#allocation6]  }
  0x8f   : > { %s612_s24 = sshll.u32 %s699_s18, 4  ;;  %s613_s24 = int_to_ptr.vmem [resolvable:$false] %s612_s24 }
  0x90   : > { %p610_p3 = pnand %p609_p13, %p952_p11  ;;  %s614_s9 = scalar_lea.vmem %s613_s24, 128 }
  0x91   : > { %p615_p4 = scmp.lt.s32.totalorder %s869_s23, %s613_s24  ;;  %p616_p10 = scmp.lt.s32.totalorder %s614_s9, %s608_s7 }
  0x92   : > { %p611_p6 = pneg %p610_p3 }
  0x93   : > { %p617_p12 = por %p616_p10, %p615_p4 }
  0x95   : > { %p618_p1 = pnand %p617_p12, %p611_p6 }
  0x97   : > { %621 = shalt.err (!%p618_p1)
}
  0x98   : > { %s622_s5 = scalar_lea.hbm %s867_s15, 64  ;;  %s626_s11 = scalar_lea.hbm %s943_s3, 128 }
  0x99   : > { %p623_p2 = scmp.ne.s32.totalorder %s867_s15, %s622_s5  ;;  %p627_p9 = scmp.lt.u32.totalorder %s867_s15, %s943_s3 }
  0x9a   : > { %p628_p0 = scmp.lt.u32.totalorder %s626_s11, %s622_s5  ;;  %p630_p13 = scmp.lt.u32.totalorder %s622_s5, %s867_s15 }
  0x9b   : > { %p624_p5 = pnand %p623_p2, %p952_p11 }
  0x9c   : > { %p629_p7 = por %p628_p0, %p627_p9 }
  0x9d   : > { %p625_p8 = pneg %p624_p5 }
  0x9e   : > { %p631_p3 = por %p630_p13, %p629_p7 }
  0xa0   : > { %p632_p6 = pnand %p631_p3, %p625_p8 }
  0xa2   : > { %635 = shalt.err (!%p632_p6)
}
  0xa3   : > { %481 = dma.vmem_to_hbm [thread:$0]  (%p952_p11), %s869_s23, 64, %s867_s15, %s311_s4  }
  0xa4 PF: > { %s349_s8 = sand.u32 1, %s674_s12   ;;  %p953_p4 = scmp.ne.s32.totalorder %s948_s27, 0 }
  0xa5   : > { %p954_p10 = scmp.ge.s32.totalorder %s694_s17, 2  ;;  %s350_s19 = scalar_lea.sflag [#allocation4], %s349_s8 }
  0xa7   : > { %p489_p12 = pnand %p954_p10, %p953_p4 }
  0xa9   : > { %665 = dma.done.wait (!%p489_p12), %s350_s19, 64  }
  0xaa   : > { %667 = vsyncadd (!%p489_p12), %s350_s19, 4294967232  ;;  %s359_s21 = scalar_lea.sflag [#allocation7], %s349_s8 }
  0xab   : > { %669 = dma.done.wait (!%p489_p12), %s359_s21, 64  }
  0xac   : > { %671 = vsyncadd (!%p489_p12), %s359_s21, 4294967232  ;;  %s23_s17 = sadd.s32 1, %s694_s17   ;;  %s955_s12 = smov %s678_s13 }
  0xad   : > { %p20_p1 = scmp.ge.s32.totalorder %s23_s17, 4   ;;  %s956_s13 = smov %s682_s14 }
  0xae   : > { %s957_s14 = smov %s776_s26  ;;  %s958_s15 = smov %s690_s16 }
  0xaf   : > { %s959_s16 = smov %s961_s20  ;;  %22 = sbr.rel (!%p20_p1) target bundleno = 8 (0x8), region = 97 }
  0xb6   :  { %364 = vsyncpa [#allocation3], 1 }
  0xb7   :  { %366 = vsyncpa [#allocation3 + $0x1], 1 }
  0xb8   :  { %367 = vsyncpa [#allocation4], 1 }
  0xb9   :  { %369 = vsyncpa [#allocation4 + $0x1], 1 }
  0xba   :  { %370 = vsyncpa [#allocation7], 1 }
  0xbb   :  { %372 = vsyncpa [#allocation7 + $0x1], 1 }

</bundles_post_ra>
